<compile_context>
chip_gen: v6e
topology: v6e:2x2x1
jax: 0.10.0
libtpu: 0.0.40
codegen_flags: <defaults>
</compile_context>

<pallas_src>
import functools
import math

import jax
import jax.numpy as jnp
from jax import lax
from jax.experimental import pallas as pl
from jax.experimental.pallas import tpu as pltpu


_FUSED_MAX_ELEMS = 512 * 1024          # data <= 2 MiB f32 -> single fused kernel


def _sublane_multiple(dtype) -> int:
    """Sublane alignment for a tile's second-to-last dim (f32:8, bf16:16, int8:32)."""
    return max(8, 32 // max(1, jnp.dtype(dtype).itemsize))


def _default_tile_bytes() -> int:
    """~2 MiB tiles on v5e-and-older (16 MiB scoped-VMEM default), ~4 MiB on v6e/v7x."""
    try:
        kind = jax.devices()[0].device_kind.lower()
    except Exception:
        return 2 * 1024 * 1024
    if any(t in kind for t in ('v2', 'v3', 'v4', 'v5 lite', 'v5e', 'lite')):
        return 2 * 1024 * 1024
    return 4 * 1024 * 1024


# ---------------------------------------------------------------------------
# Fused fast path: whole batch resident in VMEM -> stats + normalize in one
# kernel (one HBM read, one write, one launch).
# ---------------------------------------------------------------------------
def _fused_kernel(count_ref,                       # scalar-prefetch (1,) int32 in SMEM
                  data_ref, mean_ref, var_ref,     # (B, D) native dtype, (1, D) f32 x2
                  out_ref, new_mean_ref, new_var_ref,
                  *, batch: int, epsilon: float, normalizer_type,
                  normalize_function: str, momentum: float):
    x = data_ref[...].astype(jnp.float32)          # cast in VMEM; HBM stays native dtype
    mean = mean_ref[...]
    var = var_ref[...]

    if normalizer_type is None:
        new_mean, new_var = mean, var
    else:
        b = float(batch)
        batch_mean = jnp.sum(x, axis=0, keepdims=True) * (1.0 / b)
        centered = x - batch_mean                  # exact two-pass variance (data resident)
        # TODO(synk): torch.var(dim=0) (ddof=1) returns NaN for batch == 1; we return 0.
        inv_bm1 = 1.0 / (b - 1.0) if batch > 1 else 1.0
        batch_var = jnp.sum(centered * centered, axis=0, keepdims=True) * inv_bm1
        if normalizer_type == 'RunningMeanStd':
            count_f = count_ref[0].astype(jnp.float32)
            total = count_f + b
            inv_total = 1.0 / total                # one scalar-row divide, reused
            delta = batch_mean - mean
            new_mean = mean + delta * (b * inv_total)
            m2 = (var * count_f + batch_var * b
                  + delta * delta * (count_f * b * inv_total))
            new_var = m2 * inv_total
        else:                                      # 'ExponentialMovingAverage'
            new_mean = momentum * mean + (1.0 - momentum) * batch_mean
            new_var = momentum * var + (1.0 - momentum) * batch_var

    new_mean_ref[...] = new_mean
    new_var_ref[...] = new_var

    # Division hoisted: one (1, D) row, then a broadcast multiply on [B, D].
    if normalize_function == 'affine':
        out = (x - new_mean) * (1.0 / (jnp.sqrt(new_var) + epsilon))
    elif normalize_function == 'scale':
        out = x * (1.0 / (jnp.sqrt(new_var) + epsilon))
    elif normalize_function == 'translate':
        out = x - new_mean
    else:                                          # 'identity'
        out = x
    out_ref[...] = out.astype(out_ref.dtype)


def _fused_forward(data, mean_row, var_row, count, *, normalizer_type,
                   normalize_function, epsilon, momentum):
    B, D = data.shape
    kernel = functools.partial(
        _fused_kernel, batch=B, epsilon=float(epsilon),
        normalizer_type=normalizer_type, normalize_function=normalize_function,
        momentum=float(momentum))
    out, new_mean_row, new_var_row = pl.pallas_call(
        kernel,
        out_shape=(jax.ShapeDtypeStruct((B, D), jnp.float32),
                   jax.ShapeDtypeStruct((1, D), jnp.float32),
                   jax.ShapeDtypeStruct((1, D), jnp.float32)),
        grid_spec=pltpu.PrefetchScalarGridSpec(
            num_scalar_prefetch=1,                 # running count -> SMEM
            grid=(1,),
            in_specs=[pl.BlockSpec((B, D), lambda i, c: (0, 0)),
                      pl.BlockSpec((1, D), lambda i, c: (0, 0)),
                      pl.BlockSpec((1, D), lambda i, c: (0, 0))],
            out_specs=(pl.BlockSpec((B, D), lambda i, c: (0, 0)),
                       pl.BlockSpec((1, D), lambda i, c: (0, 0)),
                       pl.BlockSpec((1, D), lambda i, c: (0, 0)))),
        compiler_params=pltpu.CompilerParams(
            dimension_semantics=("arbitrary",),
            vmem_limit_bytes=32 * 1024 * 1024),
    )(count, data, mean_row, var_row)
    return out, new_mean_row[0], new_var_row[0]


# ---------------------------------------------------------------------------
# Tiled path, pass 1: per-core partial sums of (x - running_mean) and its
# square.  Grid = (2-way TensorCore split, batch tiles).
# ---------------------------------------------------------------------------
def _tiled_stats_kernel(data_ref, mean_ref, s1_ref, s2_ref, s1_acc, s2_acc, *,
                        tb: int, lane: int, nj: int, valid_rows: int, grouped: bool):
    c = pl.program_id(0)
    j = pl.program_id(1)

    @pl.when(j == 0)
    def _init():
        s1_acc[...] = jnp.zeros_like(s1_acc)
        s2_acc[...] = jnp.zeros_like(s2_acc)

    x = data_ref[...].astype(jnp.float32)
    # Shift by the resident running mean: the single-pass variance then acts on
    # (x - mean), avoiding catastrophic cancellation when |mean| >> std.
    xc = x - mean_ref[...]
    # Mask the ragged tail (and any fully out-of-range block of the core split).
    base = (c * nj + j) * tb
    rows = lax.broadcasted_iota(jnp.int32, (tb, lane), 0) + base
    xc = jnp.where(rows < valid_rows, xc, 0.0)

    if grouped:
        # Pure-VALU per-tile accumulation into (8, lane); the single
        # cross-sublane reduce happens once, in the wrapper.
        s1_acc[...] += jnp.sum(xc.reshape(tb // 8, 8, lane), axis=0)
        s2_acc[...] += jnp.sum((xc * xc).reshape(tb // 8, 8, lane), axis=0)
    else:
        s1_acc[0:1, :] += jnp.sum(xc, axis=0, keepdims=True)
        s2_acc[0:1, :] += jnp.sum(xc * xc, axis=0, keepdims=True)

    @pl.when(j == nj - 1)
    def _finalize():
        s1_ref[...] = s1_acc[...]
        s2_ref[...] = s2_acc[...]


# ---------------------------------------------------------------------------
# Tiled path, pass 2: normalize with the updated statistics (pure VALU
# broadcast subtract / multiply; tiles shard across cores via "parallel").
# ---------------------------------------------------------------------------
def _tiled_normalize_kernel(data_ref, mean_ref, inv_ref, out_ref, *,
                            normalize_function: str):
    x = data_ref[...].astype(jnp.float32)
    if normalize_function == 'affine':
        out = (x - mean_ref[...]) * inv_ref[...]
    elif normalize_function == 'scale':
        out = x * inv_ref[...]
    else:                                          # 'translate'
        out = x - mean_ref[...]
    out_ref[...] = out.astype(out_ref.dtype)


def _tiled_forward(data, mean_vec, var_vec, count, *, normalizer_type,
                   normalize_function, epsilon, momentum, tile_rows):
    B, D = data.shape

    # Lane folding: when D is narrow and divides 128 (and B folds evenly),
    # present a dense 128-lane last dim so stores are unmasked `vst`.
    if D < 128 and 128 % D == 0 and B % (128 // D) == 0:
        fold, lane = 128 // D, 128
    else:
        # TODO(synk): lane-sparse fallback (masked stores) when D neither divides
        # nor is a multiple of 128; feature padding to 128 lanes not implemented.
        fold, lane = 1, D
    folded_rows = B // fold
    folded = data.reshape(folded_rows, lane)       # row-major -> zero-cost view

    sub = _sublane_multiple(data.dtype)
    if tile_rows is not None:
        tb = int(tile_rows)
        if tb % sub != 0:
            raise ValueError(f'tile_rows must be a multiple of {sub}')
    else:
        tb = max(sub, (_default_tile_bytes() // (lane * 4)) // sub * sub)
        tb = min(tb, -(-folded_rows // sub) * sub)
    nb = max(1, -(-folded_rows // tb))
    # Stats sweep split over (up to) two TensorCores: ~2x on v7x, harmless on
    # single-TC v5e/v6e (the parallel axis just iterates there).
    split = 2 if nb >= 2 else 1
    nj = -(-nb // split)
    nb_m1 = nb - 1

    mean_l = jnp.tile(mean_vec.reshape(1, D), (1, fold))   # lane l -> feature l % D

    if normalizer_type is None:
        new_mean, new_var = mean_vec, var_vec
    else:
        stats_kernel = functools.partial(
            _tiled_stats_kernel, tb=tb, lane=lane, nj=nj,
            valid_rows=folded_rows, grouped=(lane % 128 == 0))
        s1, s2 = pl.pallas_call(
            stats_kernel,
            out_shape=(jax.ShapeDtypeStruct((split * 8, lane), jnp.float32),
                       jax.ShapeDtypeStruct((split * 8, lane), jnp.float32)),
            grid=(split, nj),
            in_specs=[
                pl.BlockSpec((tb, lane),
                             lambda c, j: (jnp.minimum(c * nj + j, nb_m1), 0)),
                pl.BlockSpec((1, lane), lambda c, j: (0, 0)),
            ],
            out_specs=(pl.BlockSpec((8, lane), lambda c, j: (c, 0)),
                       pl.BlockSpec((8, lane), lambda c, j: (c, 0))),
            scratch_shapes=[pltpu.VMEM((8, lane), jnp.float32),
                            pltpu.VMEM((8, lane), jnp.float32)],
            compiler_params=pltpu.CompilerParams(
                dimension_semantics=("parallel", "arbitrary"),
                vmem_limit_bytes=32 * 1024 * 1024),
        )(folded, mean_l)

        # Tiny (16 x lane) finalize in plain JAX: combine per-core / per-sublane /
        # per-lane-segment partial sums, then merge with the running stats.
        s1 = jnp.sum(s1, axis=0)                   # (lane,)
        s2 = jnp.sum(s2, axis=0)
        if fold > 1:
            s1 = jnp.sum(s1.reshape(fold, D), axis=0)
            s2 = jnp.sum(s2.reshape(fold, D), axis=0)
        b = float(B)
        batch_mean = mean_vec + s1 / b
        # TODO(synk): torch.var(dim=0) (ddof=1) returns NaN for B == 1; we return 0.
        denom = float(B - 1) if B > 1 else 1.0
        batch_var = jnp.maximum(s2 - (s1 * s1) / b, 0.0) / denom
        if normalizer_type == 'RunningMeanStd':
            count_f = count[0].astype(jnp.float32)
            total = count_f + b
            delta = batch_mean - mean_vec
            new_mean = mean_vec + delta * (b / total)
            m2 = (var_vec * count_f + batch_var * b
                  + delta * delta * (count_f * b / total))
            new_var = m2 / total
        else:                                      # 'ExponentialMovingAverage'
            new_mean = momentum * mean_vec + (1.0 - momentum) * batch_mean
            new_var = momentum * var_vec + (1.0 - momentum) * batch_var

    if normalize_function == 'identity':
        return data, new_mean, new_var

    # Division hoisted off the [B, D] hot path: one (D,) row here, broadcast
    # multiplies inside the normalize kernel.
    inv_l = jnp.tile((1.0 / (jnp.sqrt(new_var) + epsilon)).reshape(1, D), (1, fold))
    mean_norm_l = jnp.tile(new_mean.reshape(1, D), (1, fold))
    norm_kernel = functools.partial(_tiled_normalize_kernel,
                                    normalize_function=normalize_function)
    out_folded = pl.pallas_call(
        norm_kernel,
        out_shape=jax.ShapeDtypeStruct((folded_rows, lane), jnp.float32),
        grid=(nb,),
        in_specs=[pl.BlockSpec((tb, lane), lambda i: (i, 0)),
                  pl.BlockSpec((1, lane), lambda i: (0, 0)),
                  pl.BlockSpec((1, lane), lambda i: (0, 0))],
        out_specs=pl.BlockSpec((tb, lane), lambda i: (i, 0)),
        compiler_params=pltpu.CompilerParams(
            dimension_semantics=("parallel",),
            vmem_limit_bytes=32 * 1024 * 1024),
    )(folded, mean_norm_l, inv_l)
    return out_folded.reshape(B, D), new_mean, new_var


# ---------------------------------------------------------------------------
# Public wrapper: Normalizer.forward in training mode.
# ---------------------------------------------------------------------------
def normalizer_forward(data, mean, var, count, *,
                       normalizer_type='RunningMeanStd',
                       normalize_function: str = 'affine',
                       epsilon: float = 1e-8,
                       momentum: float = 0.9,
                       tile_rows=None,
                       fused_max_elems: int = _FUSED_MAX_ELEMS):
    """data: [B, *shape]; mean/var: [*shape]; count: [1] int.

    Returns (normalized, new_mean, new_var, new_count) -- the functional
    equivalent of the module's buffer update + normalize().
    """
    if normalize_function not in ('affine', 'scale', 'translate', 'identity'):
        raise ValueError(f'Invalid normalization function type: {normalize_function}')
    if normalizer_type not in ('RunningMeanStd', 'ExponentialMovingAverage', None):
        raise ValueError(f'Invalid normalizer type: {normalizer_type}')

    orig_shape = data.shape
    B = orig_shape[0]
    feat_shape = tuple(orig_shape[1:])
    D = int(math.prod(feat_shape)) if feat_shape else 1
    data2 = data.reshape(B, D)
    mean_vec = mean.reshape(D).astype(jnp.float32)
    var_vec = var.reshape(D).astype(jnp.float32)
    count = count.reshape(1).astype(jnp.int32)
    # TODO(synk): torch keeps count as int64; JAX x64 is off by default, so int32 here.
    new_count = count + jnp.int32(B)

    if normalize_function == 'identity' and normalizer_type is None:
        return data, mean_vec.reshape(mean.shape), var_vec.reshape(var.shape), new_count

    if B * D <= fused_max_elems:
        out, new_mean, new_var = _fused_forward(
            data2, mean_vec.reshape(1, D), var_vec.reshape(1, D), count,
            normalizer_type=normalizer_type, normalize_function=normalize_function,
            epsilon=epsilon, momentum=momentum)
    else:
        out, new_mean, new_var = _tiled_forward(
            data2, mean_vec, var_vec, count,
            normalizer_type=normalizer_type, normalize_function=normalize_function,
            epsilon=epsilon, momentum=momentum, tile_rows=tile_rows)

    if normalize_function == 'identity':
        out = data                                   # torch identity returns input as-is
    else:
        out = out.reshape(orig_shape)
    return out, new_mean.reshape(mean.shape), new_var.reshape(var.shape), new_count


# ---------------------------------------------------------------------------
# Pure-JAX reference mirroring the PyTorch module
# ---------------------------------------------------------------------------
def _ref_forward(data, mean, var, count, *, normalizer_type='RunningMeanStd',
                 normalize_function='affine', epsilon=1e-8, momentum=0.9):
    x = data.astype(jnp.float32).reshape(data.shape[0], -1)
    B = x.shape[0]
    mean = mean.reshape(-1).astype(jnp.float32)
    var = var.reshape(-1).astype(jnp.float32)
    if normalizer_type == 'RunningMeanStd':
        batch_mean = jnp.mean(x, axis=0)
        batch_var = jnp.var(x, axis=0, ddof=1)
        count_f = count.reshape(-1)[0].astype(jnp.float32)
        total = count_f + B
        delta = batch_mean - mean
        new_mean = mean + delta * B / total
        m2 = var * count_f + batch_var * B + jnp.square(delta) * (count_f * B / total)
        new_var = m2 / total
    elif normalizer_type == 'ExponentialMovingAverage':
        batch_mean = jnp.mean(x, axis=0)
        batch_var = jnp.var(x, axis=0, ddof=1)
        new_mean = momentum * mean + (1.0 - momentum) * batch_mean
        new_var = momentum * var + (1.0 - momentum) * batch_var
    else:
        new_mean, new_var = mean, var
    std = jnp.sqrt(new_var)
    if normalize_function == 'affine':
        out = ((x - new_mean) / (std + epsilon)).reshape(data.shape)
    elif normalize_function == 'scale':
        out = (x / (std + epsilon)).reshape(data.shape)
    elif normalize_function == 'translate':
        out = (x - new_mean).reshape(data.shape)
    else:
        out = data
    return out, new_mean, new_var, count.reshape(1).astype(jnp.int32) + B


if __name__ == "__main__":
    def check(name, got, want, atol=1e-3, rtol=1e-3):
        out, nm, nv, nc = got
        r_out, r_nm, r_nv, r_nc = want
        assert jnp.allclose(nm, r_nm, atol=atol, rtol=rtol), f"{name}: mean mismatch"
        assert jnp.allclose(nv, r_nv, atol=atol, rtol=rtol), f"{name}: var mismatch"
        assert jnp.allclose(out, r_out, atol=atol, rtol=rtol), f"{name}: output mismatch"
        assert int(nc[0]) == int(r_nc[0]), f"{name}: count mismatch"

    key = jax.random.PRNGKey(0)
    k1, k2, k3, k4 = jax.random.split(key, 4)

    D = 32
    mean0 = jnp.zeros((D,), jnp.float32)
    var0 = jnp.ones((D,), jnp.float32)
    count0 = jnp.zeros((1,), jnp.int32)

    # 1) Fused fast path: RunningMeanStd + affine (the main safe_rlhf config).
    data1 = jax.random.normal(k1, (8, D), jnp.float32) * 3.0 + 1.5
    got1 = normalizer_forward(data1, mean0, var0, count0,
                              normalizer_type='RunningMeanStd',
                              normalize_function='affine')
    jax.block_until_ready(got1)
    check('fused-rms-affine', got1,
          _ref_forward(data1, mean0, var0, count0,
                       normalizer_type='RunningMeanStd', normalize_function='affine'))

    # 2) Tiled path (forced), lane folding + 2-core split, second update step.
    _, nm1, nv1, nc1 = got1
    data2 = jax.random.normal(k2, (64, D), jnp.float32) * 2.0 - 0.7
    got2 = normalizer_forward(data2, nm1, nv1, nc1,
                              normalizer_type='RunningMeanStd',
                              normalize_function='affine',
                              tile_rows=8, fused_max_elems=0)
    jax.block_until_ready(got2)
    check('tiled-fold-split', got2,
          _ref_forward(data2, nm1, nv1, nc1,
                       normalizer_type='RunningMeanStd', normalize_function='affine'))

    # 3) Tiled path with a ragged tail (masked rows + clamped split index).
    data3 = jax.random.normal(k3, (84, D), jnp.float32) * 3.0 + 1.5
    got3 = normalizer_forward(data3, mean0, var0, count0,
                              normalizer_type='RunningMeanStd',
                              normalize_function='affine',
                              tile_rows=8, fused_max_elems=0)
    jax.block_until_ready(got3)
    check('tiled-ragged', got3,
          _ref_forward(data3, mean0, var0, count0,
                       normalizer_type='RunningMeanStd', normalize_function='affine'))

    # 4) Tiled path, lane-sparse fallback (D does not divide 128).
    D4 = 20
    data4 = jax.random.normal(k4, (56, D4), jnp.float32) * 1.3 + 0.2
    got4 = normalizer_forward(data4, jnp.zeros((D4,), jnp.float32),
                              jnp.ones((D4,), jnp.float32), count0,
                              normalizer_type='RunningMeanStd',
                              normalize_function='affine',
                              tile_rows=8, fused_max_elems=0)
    jax.block_until_ready(got4)
    check('tiled-lane-sparse', got4,
          _ref_forward(data4, jnp.zeros((D4,), jnp.float32),
                       jnp.ones((D4,), jnp.float32), count0,
                       normalizer_type='RunningMeanStd', normalize_function='affine'))

    # 5) Fused: ExponentialMovingAverage + scale.
    got5 = normalizer_forward(data1, mean0, var0, count0,
                              normalizer_type='ExponentialMovingAverage',
                              normalize_function='scale', momentum=0.9)
    jax.block_until_ready(got5)
    check('fused-ema-scale', got5,
          _ref_forward(data1, mean0, var0, count0,
                       normalizer_type='ExponentialMovingAverage',
                       normalize_function='scale', momentum=0.9))

    # 6) Fused: IdentityNormalizer (type None) + translate, bf16 input.
    data6 = (jax.random.normal(k1, (16, 8), jnp.float32) * 1.5).astype(jnp.bfloat16)
    mean6 = 0.5 * jnp.ones((8,), jnp.float32)
    var6 = 2.0 * jnp.ones((8,), jnp.float32)
    got6 = normalizer_forward(data6, mean6, var6, count0,
                              normalizer_type=None, normalize_function='translate')
    jax.block_until_ready(got6)
    check('fused-identity-translate-bf16', got6,
          _ref_forward(data6, mean6, var6, count0,
                       normalizer_type=None, normalize_function='translate'))

    print("KERNEL_OK")
</pallas_src>

<mosaic_0001>
module attributes {stable_mosaic.version = 11 : i64} {
  func.func @_fused_kernel(%arg0: i32, %arg1: memref<1xi32, #tpu.memory_space<smem>>, %arg2: memref<8x32xf32, #tpu.memory_space<vmem>>, %arg3: memref<1x32xf32, #tpu.memory_space<vmem>>, %arg4: memref<1x32xf32, #tpu.memory_space<vmem>>, %arg5: memref<8x32xf32, #tpu.memory_space<vmem>>, %arg6: memref<1x32xf32, #tpu.memory_space<vmem>>, %arg7: memref<1x32xf32, #tpu.memory_space<vmem>>) attributes {dimension_semantics = [#tpu.dimension_semantics<arbitrary>], iteration_bounds = array<i64: 1>, scalar_prefetch = 1 : i64, scratch_operands = 0 : i64, tpu.core_type = #tpu.core_type<tc>, window_params = [{pipeline_mode = #tpu.pipeline_mode<synchronous>, transform_indices = @transform_0, window_bounds = array<i64: 8, 32>}, {pipeline_mode = #tpu.pipeline_mode<synchronous>, transform_indices = @transform_1, window_bounds = array<i64: 1, 32>}, {pipeline_mode = #tpu.pipeline_mode<synchronous>, transform_indices = @transform_2, window_bounds = array<i64: 1, 32>}, {pipeline_mode = #tpu.pipeline_mode<synchronous>, transform_indices = @transform_3, window_bounds = array<i64: 8, 32>}, {pipeline_mode = #tpu.pipeline_mode<synchronous>, transform_indices = @transform_4, window_bounds = array<i64: 1, 32>}, {pipeline_mode = #tpu.pipeline_mode<synchronous>, transform_indices = @transform_5, window_bounds = array<i64: 1, 32>}]} {
    %c0 = arith.constant 0 : index
    %c0_0 = arith.constant 0 : index
    %0 = vector.load %arg2[%c0, %c0_0] : memref<8x32xf32, #tpu.memory_space<vmem>>, vector<8x32xf32>
    %c0_1 = arith.constant 0 : index
    %c0_2 = arith.constant 0 : index
    %1 = vector.load %arg3[%c0_1, %c0_2] : memref<1x32xf32, #tpu.memory_space<vmem>>, vector<1x32xf32>
    %c0_3 = arith.constant 0 : index
    %c0_4 = arith.constant 0 : index
    %2 = vector.load %arg4[%c0_3, %c0_4] : memref<1x32xf32, #tpu.memory_space<vmem>>, vector<1x32xf32>
    %cst = arith.constant dense<0.000000e+00> : vector<32xf32>
    %3 = vector.multi_reduction <add>, %0, %cst [0] : vector<8x32xf32> to vector<32xf32>
    %4 = vector.shape_cast %3 : vector<32xf32> to vector<1x32xf32>
    %cst_5 = arith.constant 1.250000e-01 : f32
    %5 = vector.broadcast %cst_5 : f32 to vector<1x32xf32>
    %6 = arith.mulf %4, %5 : vector<1x32xf32>
    %7 = vector.broadcast %6 : vector<1x32xf32> to vector<8x32xf32>
    %8 = arith.subf %0, %7 : vector<8x32xf32>
    %9 = arith.mulf %8, %8 : vector<8x32xf32>
    %cst_6 = arith.constant dense<0.000000e+00> : vector<32xf32>
    %10 = vector.multi_reduction <add>, %9, %cst_6 [0] : vector<8x32xf32> to vector<32xf32>
    %11 = vector.shape_cast %10 : vector<32xf32> to vector<1x32xf32>
    %cst_7 = arith.constant 0.142857149 : f32
    %12 = vector.broadcast %cst_7 : f32 to vector<1x32xf32>
    %13 = arith.mulf %11, %12 : vector<1x32xf32>
    %c0_8 = arith.constant 0 : index
    %14 = memref.load %arg1[%c0_8] : memref<1xi32, #tpu.memory_space<smem>>
    %15 = arith.sitofp %14 : i32 to f32
    %cst_9 = arith.constant 8.000000e+00 : f32
    %16 = arith.addf %15, %cst_9 : f32
    %cst_10 = arith.constant 1.000000e+00 : f32
    %17 = arith.divf %cst_10, %16 : f32
    %18 = arith.subf %6, %1 : vector<1x32xf32>
    %cst_11 = arith.constant 8.000000e+00 : f32
    %19 = arith.mulf %cst_11, %17 : f32
    %20 = vector.broadcast %19 : f32 to vector<1x32xf32>
    %21 = arith.mulf %18, %20 : vector<1x32xf32>
    %22 = arith.addf %1, %21 : vector<1x32xf32>
    %23 = vector.broadcast %15 : f32 to vector<1x32xf32>
    %24 = arith.mulf %2, %23 : vector<1x32xf32>
    %cst_12 = arith.constant 8.000000e+00 : f32
    %25 = vector.broadcast %cst_12 : f32 to vector<1x32xf32>
    %26 = arith.mulf %13, %25 : vector<1x32xf32>
    %27 = arith.addf %24, %26 : vector<1x32xf32>
    %28 = arith.mulf %18, %18 : vector<1x32xf32>
    %cst_13 = arith.constant 8.000000e+00 : f32
    %29 = arith.mulf %15, %cst_13 : f32
    %30 = arith.mulf %29, %17 : f32
    %31 = vector.broadcast %30 : f32 to vector<1x32xf32>
    %32 = arith.mulf %28, %31 : vector<1x32xf32>
    %33 = arith.addf %27, %32 : vector<1x32xf32>
    %34 = vector.broadcast %17 : f32 to vector<1x32xf32>
    %35 = arith.mulf %33, %34 : vector<1x32xf32>
    %c0_14 = arith.constant 0 : index
    %c0_15 = arith.constant 0 : index
    %36 = vector.load %arg6[%c0_14, %c0_15] : memref<1x32xf32, #tpu.memory_space<vmem>>, vector<1x32xf32>
    tpu.vector_store %arg6[%c0_14, %c0_15], %22 {strides = array<i32>} : memref<1x32xf32, #tpu.memory_space<vmem>>, vector<1x32xf32>,
    %c0_16 = arith.constant 0 : index
    %c0_17 = arith.constant 0 : index
    %37 = vector.load %arg7[%c0_16, %c0_17] : memref<1x32xf32, #tpu.memory_space<vmem>>, vector<1x32xf32>
    tpu.vector_store %arg7[%c0_16, %c0_17], %35 {strides = array<i32>} : memref<1x32xf32, #tpu.memory_space<vmem>>, vector<1x32xf32>,
    %38 = vector.broadcast %22 : vector<1x32xf32> to vector<8x32xf32>
    %39 = arith.subf %0, %38 : vector<8x32xf32>
    %40 = math.sqrt %35 : vector<1x32xf32>
    %cst_18 = arith.constant 9.99999993E-9 : f32
    %41 = vector.broadcast %cst_18 : f32 to vector<1x32xf32>
    %42 = arith.addf %40, %41 : vector<1x32xf32>
    %cst_19 = arith.constant 1.000000e+00 : f32
    %43 = vector.broadcast %cst_19 : f32 to vector<1x32xf32>
    %44 = arith.divf %43, %42 : vector<1x32xf32>
    %45 = vector.broadcast %44 : vector<1x32xf32> to vector<8x32xf32>
    %46 = arith.mulf %39, %45 : vector<8x32xf32>
    %c0_20 = arith.constant 0 : index
    %c0_21 = arith.constant 0 : index
    %47 = vector.load %arg5[%c0_20, %c0_21] : memref<8x32xf32, #tpu.memory_space<vmem>>, vector<8x32xf32>
    tpu.vector_store %arg5[%c0_20, %c0_21], %46 {strides = array<i32>} : memref<8x32xf32, #tpu.memory_space<vmem>>, vector<8x32xf32>,
    return
  }
  func.func @transform_0(%arg0: i32, %arg1: memref<1xi32, #tpu.memory_space<smem>>) -> (i32, i32) {
    %c0_i32 = arith.constant 0 : i32
    %c0_i32_0 = arith.constant 0 : i32
    %c0_i32_1 = arith.constant 0 : i32
    return %c0_i32, %c0_i32_0 : i32, i32
  }
  func.func @transform_1(%arg0: i32, %arg1: memref<1xi32, #tpu.memory_space<smem>>) -> (i32, i32) {
    %c0_i32 = arith.constant 0 : i32
    %c0_i32_0 = arith.constant 0 : i32
    %c0_i32_1 = arith.constant 0 : i32
    return %c0_i32, %c0_i32_0 : i32, i32
  }
  func.func @transform_2(%arg0: i32, %arg1: memref<1xi32, #tpu.memory_space<smem>>) -> (i32, i32) {
    %c0_i32 = arith.constant 0 : i32
    %c0_i32_0 = arith.constant 0 : i32
    %c0_i32_1 = arith.constant 0 : i32
    return %c0_i32, %c0_i32_0 : i32, i32
  }
  func.func @transform_3(%arg0: i32, %arg1: memref<1xi32, #tpu.memory_space<smem>>) -> (i32, i32) {
    %c0_i32 = arith.constant 0 : i32
    %c0_i32_0 = arith.constant 0 : i32
    %c0_i32_1 = arith.constant 0 : i32
    return %c0_i32, %c0_i32_0 : i32, i32
  }
  func.func @transform_4(%arg0: i32, %arg1: memref<1xi32, #tpu.memory_space<smem>>) -> (i32, i32) {
    %c0_i32 = arith.constant 0 : i32
    %c0_i32_0 = arith.constant 0 : i32
    %c0_i32_1 = arith.constant 0 : i32
    return %c0_i32, %c0_i32_0 : i32, i32
  }
  func.func @transform_5(%arg0: i32, %arg1: memref<1xi32, #tpu.memory_space<smem>>) -> (i32, i32) {
    %c0_i32 = arith.constant 0 : i32
    %c0_i32_0 = arith.constant 0 : i32
    %c0_i32_1 = arith.constant 0 : i32
    return %c0_i32, %c0_i32_0 : i32, i32
  }
}

</mosaic_0001>

<bundles_post_ra>
// kernel: tpu_custom_call.1
= control target key start
LH: loop header
LB: loop body
LE: loop exit
PB: predicated region body
PF: predicated region fallthrough
CT: control target
= control target key end

     0   :  { %13 = vsyncpa [#allocation5], 0  ;;  %s321_s0 = inlined_call_operand.<no memory space> [shape: s32[1], index: 0, kind: input, shape index: {}]   ;;  %s322_s1 = inlined_call_operand.hbm [shape: f32[8,32], index: 1, kind: input, shape index: {}]   ;;  %s323_s2 = inlined_call_operand.vmem [shape: f32[1,32], index: 2, kind: input, shape index: {}]   ;;  %s324_s3 = inlined_call_operand.vmem [shape: f32[1,32], index: 3, kind: input, shape index: {}]   ;;  %s325_s4 = inlined_call_operand.hbm [shape: f32[8,32], index: 4, kind: output, shape index: {0}]   ;;  %s326_s5 = inlined_call_operand.hbm [shape: f32[1,32], index: 5, kind: output, shape index: {1}]   ;;  %s327_s6 = inlined_call_operand.hbm [shape: f32[1,32], index: 6, kind: output, shape index: {2}]  }
   0x1   :  { %14 = vsyncpa [#allocation6], 0 }
   0x2   :  { %15 = vsyncpa [#allocation9], 0  ;;  %s246_s21 = smov [#allocation4]  }
   0x3   :  { %s22_s22 = sshll.u32 %s246_s21, 4  ;;  %s23_s22 = int_to_ptr.vmem [resolvable:$true] %s22_s22 }
   0x4   :  { %s168_s23 = scalar_lea.vmem %s23_s22, 128  ;;  %p173_p1 = scmp.lt.s32.totalorder %s23_s22, %s23_s22 }
   0x5   :  { %p169_p0 = scmp.ne.s32.totalorder %s23_s22, %s168_s23  ;;  %p174_p2 = scmp.lt.s32.totalorder %s168_s23, %s168_s23 }
   0x7   :  { %p175_p3 = por %p174_p2, %p173_p1 }
   0x9   :  { %p176_p4 = pnand %p175_p3, %p169_p0 }
   0xb   :  { %179 = shalt.err (!%p176_p4)
}
   0xc   :  { %25 = dma.hbm_to_vmem [thread:$0]  %s322_s1, 128, %s23_s22, [#allocation5]  }
   0xd   :  { %s291_s28 = scvt.s32.f32 %s321_s0 }
   0xe   :  { %240 = dma.done.wait [#allocation5], 128  }
   0xf   :  { %241 = vsyncadd [#allocation5], 4294967168  ;;  %s57_s29 = sadd.f32 8.0, %s291_s28  ;;  %vm36_vm0 = vcmask 261120   ;;  %v294_v1 = vld [vmem:[#allocation4] sm:$0xff]  ;;  %v66_v23 = vstv %s291_s28  ;;  %s71_s8 = smul.f32 8.0, %s291_s28 }
  0x10   :  { %v37_v2 = vsel %vm36_vm0, %v294_v1, 0.0  ;;  %v34_v20 = vld [vmem:[%s323_s2] sm:$0x1]  ;;  %s247_s12 = smov [#allocation8]   ;;  %vm78_vm1 = vcmask 253952   ;;  %s248_s2 = smov [#allocation10]  }
  0x11   :  { %v58_v0 = vstv %s57_s29  ;;  %v38_v3 = vrot.slane %v37_v2, 4  ;;  %v35_v22 = vld [vmem:[%s324_s3] sm:$0x1]  ;;  %s122_s13 = sshll.u32 %s247_s12, 4  ;;  %s132_s14 = sshll.u32 %s248_s2, 4  ;;  %s123_s13 = int_to_ptr.vmem [resolvable:$true] %s122_s13  ;;  %s133_s14 = int_to_ptr.vmem [resolvable:$true] %s132_s14 }
  0x12   :  { %154 = vrcp.f32 %v58_v0  ;;  %v67_v25 = vmul.f32 %v66_v23, %v35_v22  ;;  %s180_s3 = scalar_lea.vmem %s123_s13, 16  ;;  %s184_s15 = scalar_lea.vmem %s123_s13, 32 }
  0x13   :  { %v39_v4 = vadd.f32 %v38_v3, %v37_v2  ;;  %p181_p5 = scmp.ne.s32.totalorder %s123_s13, %s180_s3  ;;  %p185_p6 = scmp.lt.s32.totalorder %s123_s13, %s123_s13 }
  0x14   :  { %p186_p7 = scmp.lt.s32.totalorder %s184_s15, %s180_s3 }
  0x15   :  { %v40_v5 = vrot.slane %v39_v4, 2 }
  0x16   :  { %p187_p8 = por %p186_p7, %p185_p6 }
  0x17   :  { %v41_v6 = vadd.f32 %v40_v5, %v39_v4 }
  0x18   :  { %p188_p9 = pnand %p187_p8, %p181_p5 }
  0x19   :  { %v42_v7 = vrot.slane %v41_v6, 1 }
  0x1b   :  { %v43_v9 = vadd.f32 %v42_v7, %v41_v6 }
  0x1d   :  { %v44_v10 = vmul.f32 0.125, %v43_v9 }
  0x1f   :  { %v155_v8 = vpop.eup %154  ;;  %v45_v11 = vsub.f32 %v294_v1, %v44_v10  ;;  %v61_v24 = vsub.f32 %v44_v10, %v34_v20 }
  0x20   :  { %148 = vpush %v155_v8 }
  0x21   :  { %v46_v12 = vmul.f32 %v45_v11, %v45_v11  ;;  %v70_v27 = vmul.f32 %v61_v24, %v61_v24 }
  0x23   :  { %v47_v13 = vsel %vm36_vm0, %v46_v12, 0.0 }
  0x24   :  { %v48_v14 = vrot.slane %v47_v13, 4 }
  0x26   :  { %v49_v15 = vadd.f32 %v48_v14, %v47_v13 }
  0x28   :  { %v50_v16 = vrot.slane %v49_v15, 2 }
  0x2a   :  { %v51_v17 = vadd.f32 %v50_v16, %v49_v15 }
  0x2c   :  { %v52_v18 = vrot.slane %v51_v17, 1 }
  0x2e   :  { %v53_v19 = vadd.f32 %v52_v18, %v51_v17 }
  0x30   :  { %v54_v21 = vmul.f32 0.14285715, %v53_v19 }
  0x32   :  { %v68_v26 = vmul.f32 8.0, %v54_v21 }
  0x34   :  { %v69_v29 = vadd.f32 %v68_v26, %v67_v25 }
  0x51   :  { %s149_s9 = spop %148 }
  0x52   :  { %s62_s10 = smul.f32 8.0, %s149_s9  ;;  %v76_v35 = vstv %s149_s9 }
  0x53   :  { %s72_s11 = smul.f32 %s149_s9, %s71_s8 }
  0x54   :  { %v63_v28 = vstv %s62_s10 }
  0x55   :  { %v64_v30 = vmul.f32 %v63_v28, %v61_v24  ;;  %v73_v31 = vstv %s72_s11 }
  0x56   :  { %v74_v32 = vmul.f32 %v73_v31, %v70_v27 }
  0x57   :  { %v65_v33 = vadd.f32 %v64_v30, %v34_v20 }
  0x58   :  { %v75_v34 = vadd.f32 %v74_v32, %v69_v29 }
  0x59   :  { %79 = vst.msk [vmem:[#allocation8] sm:$0x1] %vm78_vm1, %v65_v33 }
  0x5a   :  { %v77_v36 = vmul.f32 %v76_v35, %v75_v34 }
  0x5b   :  { %191 = shalt.err (!%p188_p9)
}
  0x5c   :  { %125 = dma.vmem_to_hbm [thread:$0]  %s123_s13, 16, %s326_s5, [#allocation9]   ;;  %156 = vrsqrt.f32 %v77_v36  ;;  %80 = vst.msk [vmem:[#allocation10] sm:$0x1] %vm78_vm1, %v77_v36 }
  0x5d   :  { %s200_s18 = scalar_lea.vmem %s133_s14, 16  ;;  %s204_s19 = scalar_lea.vmem %s133_s14, 32 }
  0x5e   :  { %p201_p10 = scmp.ne.s32.totalorder %s133_s14, %s200_s18  ;;  %p205_p11 = scmp.lt.s32.totalorder %s133_s14, %s133_s14 }
  0x5f   :  { %p206_p12 = scmp.lt.s32.totalorder %s204_s19, %s200_s18 }
  0x61   :  { %p207_p13 = por %p206_p12, %p205_p11 }
  0x63   :  { %p208_p0 = pnand %p207_p13, %p201_p10 }
  0x65   :  { %211 = shalt.err (!%p208_p0)
}
  0x66   :  { %135 = dma.vmem_to_hbm [thread:$0]  %s133_s14, 16, %s327_s6, [#allocation9]   ;;  %vm90_vm2 = vcmp.eq.f32.partialorder %v77_v36, inf  ;;  %v93_v39 = vand.u32 2147483648, %v77_v36  ;;  %vm92_vm3 = vcmp.eq.f32.partialorder %v77_v36, 0.0  ;;  %v82_v42 = vlaneseq }
  0x67   :  { %s249_s5 = smov [#allocation7]  }
  0x68   :  { %v83_v44 = vshrl.u32 %v82_v42, 7  ;;  %s112_s22 = sshll.u32 %s249_s5, 4  ;;  %s113_s22 = int_to_ptr.vmem [resolvable:$true] %s112_s22 }
  0x69   :  { %v157_v37 = vpop.eup %156  ;;  %s220_s6 = scalar_lea.vmem %s113_s22, 128  ;;  %p225_p2 = scmp.lt.s32.totalorder %s113_s22, %s113_s22 }
  0x6a   :  { %v89_v38 = vmul.f32 %v157_v37, %v77_v36  ;;  %v84_v45 = vsub.s32 0, %v83_v44  ;;  %p221_p1 = scmp.ne.s32.totalorder %s113_s22, %s220_s6  ;;  %p226_p3 = scmp.lt.s32.totalorder %s220_s6, %s220_s6 }
  0x6c   :  { %v91_v40 = vsel %vm90_vm2, %v77_v36, %v89_v38  ;;  %v85_v46 = vrot.slane %v65_v33, %v84_v45  ;;  %p227_p4 = por %p226_p3, %p225_p2 }
  0x6d   :  { %v94_v41 = vsel %vm92_vm3, %v93_v39, %v91_v40 }
  0x6e   :  { %v95_v43 = vadd.f32 1e-08, %v94_v41  ;;  %v87_v48 = vsub.f32 %v294_v1, %v85_v46  ;;  %p228_p5 = pnand %p227_p4, %p221_p1 }
  0x70   :  { %158 = vrcp.f32 %v95_v43 }
  0x7d   :  { %v159_v47 = vpop.eup %158 }
  0x7e   :  { %v102_v49 = vrot.slane %v159_v47, %v84_v45 }
  0x80   :  { %v104_v50 = vmul.f32 %v102_v49, %v87_v48 }
  0x82   :  { %105 = vst.msk [vmem:[#allocation7] sm:$0xff] %vm36_vm0, %v104_v50 }
  0x83   :  { %231 = shalt.err (!%p228_p5)
}
  0x84   :  { %115 = dma.vmem_to_hbm [thread:$0]  %s113_s22, 128, %s325_s4, [#allocation6]  }
  0x85   :  { %242 = dma.done.wait [#allocation6], 128  }
  0x86   :  { %243 = vsyncadd [#allocation6], 4294967168 }
  0x87   :  { %244 = dma.done.wait [#allocation9], 32  }
  0x88   :  { %245 = vsyncadd [#allocation9], 4294967264 }
  0x89   :  { %145 = vsyncpa [#allocation5], 1 }
  0x8a   :  { %146 = vsyncpa [#allocation6], 1 }
  0x8b   :  { %147 = vsyncpa [#allocation9], 1 }

</bundles_post_ra>
